<compile_context>
chip_gen: v5e
topology: v5e:2x2
jax: 0.10.0
libtpu: 0.0.40
codegen_flags: <defaults>
</compile_context>

<pallas_src>
import jax
import jax.numpy as jnp
from jax.experimental import pallas as pl
from jax.experimental.pallas import tpu as pltpu

_LANE = 128
_VMEM_LIMIT_BYTES = 48 * 1024 * 1024          # scoped VMEM budget for the copy call
_TARGET_BLOCK_BYTES = 8 * 1024 * 1024         # per VMEM buffer (in+out double-buffered)
_SMALL_WHOLE_ARRAY_BYTES = 8 * 1024 * 1024    # odd-size single-block fallback limit


def _identity_kernel(x_ref, o_ref):
    # Elementwise identity on the current VMEM tile (wide unmasked vst for full
    # blocks; Pallas masks the partial last block automatically).
    o_ref[...] = x_ref[...]


def reuse_input_observer_forward(x: jax.Array) -> jax.Array:
    """ReuseInputObserver.forward: pure identity.

    The observer performs no computation and records no statistics, so the
    highest-value implementation is to not launch any kernel at all — `x` is
    returned bit-exact with zero HBM traffic, for every shape and dtype.
    """
    return x


def reuse_input_observer_copy(x: jax.Array) -> jax.Array:
    """Bit-exact copy of `x` into a fresh buffer via a Pallas streaming copy.

    Only needed when a caller requires a physically distinct output buffer
    (e.g. for donation); otherwise use `reuse_input_observer_forward`.
    """
    orig_shape = x.shape
    dtype = x.dtype
    itemsize = jnp.dtype(dtype).itemsize

    total = 1
    for d in orig_shape:
        total *= d

    if total == 0:
        return x  # nothing to copy; identity result is exact

    nbytes = total * itemsize

    if total % _LANE != 0:
        # Odd sizes: a single full-array block is always a legal block shape;
        # use it when it fits comfortably in VMEM.
        if nbytes <= _SMALL_WHOLE_ARRAY_BYTES:
            flat = x.reshape(1, total)
            out = pl.pallas_call(
                _identity_kernel,
                out_shape=jax.ShapeDtypeStruct((1, total), dtype),
                compiler_params=pltpu.CompilerParams(
                    vmem_limit_bytes=_VMEM_LIMIT_BYTES
                ),
            )(flat)
            return out.reshape(orig_shape)
        # TODO(synk): large non-lane-aligned copies would need a padded tail
        # pass; the identity result is bit-exact, so return x here.
        return x

    rows = total // _LANE
    x2d = x.reshape(rows, _LANE)

    # Dtype-aware sublane granularity: sub-32-bit dtypes pack along sublanes,
    # so a fully packed vreg needs 32 // itemsize rows (8 f32, 16 bf16, 32 i8).
    sub = max(8, 32 // itemsize)

    # ~8 MiB per VMEM buffer; 2 input + 2 output double-buffers ≈ 32 MiB
    # pipeline footprint, under the 48 MiB scoped limit (and v7x's 64 MiB VMEM).
    row_tile_max = max(sub, (_TARGET_BLOCK_BYTES // (_LANE * itemsize)) // sub * sub)

    if rows <= row_tile_max:
        # Single grid step with a full-dim block (legal even when rows < 8 or
        # not a multiple of the sublane count). No forced split: the grid is a
        # sequential loop on single-TC chips, so extra steps are pure overhead.
        row_tile = rows
    else:
        row_tile = row_tile_max

    grid = (pl.cdiv(rows, row_tile),)  # Pallas masks the partial last block

    out2d = pl.pallas_call(
        _identity_kernel,
        out_shape=jax.ShapeDtypeStruct((rows, _LANE), dtype),
        grid=grid,
        in_specs=[pl.BlockSpec((row_tile, _LANE), lambda i: (i, 0))],
        out_specs=pl.BlockSpec((row_tile, _LANE), lambda i: (i, 0)),
        compiler_params=pltpu.CompilerParams(
            dimension_semantics=("parallel",),
            vmem_limit_bytes=_VMEM_LIMIT_BYTES,
        ),
        cost_estimate=pl.CostEstimate(
            flops=0,
            transcendentals=0,
            bytes_accessed=2 * nbytes,
        ),
    )(x2d)

    return out2d.reshape(orig_shape)


if __name__ == "__main__":
    key = jax.random.PRNGKey(0)
    # Small NCHW conv-style activation: batch=2, channels=4, spatial=16x16.
    x = jax.random.normal(key, (2, 4, 16, 16), dtype=jnp.float32)

    # Default forward: pure identity, no kernel launched.
    y = reuse_input_observer_forward(x)
    y = jax.block_until_ready(y)
    assert y.shape == x.shape, (y.shape, x.shape)
    assert y.dtype == x.dtype, (y.dtype, x.dtype)
    assert bool(jnp.array_equal(y, x, equal_nan=True)), "identity forward mismatch"

    # Pallas streaming-copy variant (distinct output buffer); run once on TPU.
    y_copy = reuse_input_observer_copy(x)
    y_copy = jax.block_until_ready(y_copy)
    assert y_copy.shape == x.shape, (y_copy.shape, x.shape)
    assert y_copy.dtype == x.dtype, (y_copy.dtype, x.dtype)
    assert bool(jnp.array_equal(y_copy, x, equal_nan=True)), "copy mismatch"

    print("KERNEL_OK")
</pallas_src>

<mosaic_0001>
module attributes {stable_mosaic.version = 11 : i64} {
  func.func @_identity_kernel(%arg0: i32, %arg1: memref<16x128xf32, #tpu.memory_space<vmem>>, %arg2: memref<16x128xf32, #tpu.memory_space<vmem>>) attributes {dimension_semantics = [#tpu.dimension_semantics<parallel>], iteration_bounds = array<i64: 1>, scalar_prefetch = 0 : i64, scratch_operands = 0 : i64, tpu.core_type = #tpu.core_type<tc>, window_params = [{transform_indices = @transform_0, window_bounds = array<i64: 16, 128>}, {transform_indices = @transform_1, window_bounds = array<i64: 16, 128>}]} {
    %c0 = arith.constant 0 : index
    %c0_0 = arith.constant 0 : index
    %0 = vector.load %arg1[%c0, %c0_0] : memref<16x128xf32, #tpu.memory_space<vmem>>, vector<16x128xf32>
    %c0_1 = arith.constant 0 : index
    %c0_2 = arith.constant 0 : index
    %1 = vector.load %arg2[%c0_1, %c0_2] : memref<16x128xf32, #tpu.memory_space<vmem>>, vector<16x128xf32>
    tpu.vector_store %arg2[%c0_1, %c0_2], %0 {strides = array<i32>} : memref<16x128xf32, #tpu.memory_space<vmem>>, vector<16x128xf32>,
    return
  }
  func.func @transform_0(%arg0: i32) -> (i32, i32) {
    %c0_i32 = arith.constant 0 : i32
    %c0_i32_0 = arith.constant 0 : i32
    return %arg0, %c0_i32 : i32, i32
  }
  func.func @transform_1(%arg0: i32) -> (i32, i32) {
    %c0_i32 = arith.constant 0 : i32
    %c0_i32_0 = arith.constant 0 : i32
    return %arg0, %c0_i32 : i32, i32
  }
}

</mosaic_0001>

<bundles_post_ra>
// kernel: tpu_custom_call.1
= control target key start
LH: loop header
LB: loop body
LE: loop exit
PB: predicated region body
PF: predicated region fallthrough
CT: control target
= control target key end

     0   :  { %6 = vsyncpa [#allocation3], 0  ;;  %s124_s0 = inlined_call_operand.hbm [shape: f32[16,128], index: 0, kind: input, shape index: {}]   ;;  %s125_s1 = inlined_call_operand.hbm [shape: f32[16,128], index: 1, kind: output, shape index: {}]  }
   0x1   :  { %7 = vsyncpa [#allocation4], 0  ;;  %s12_s8 = sshll.u32 %s124_s0, 4  ;;  %s104_s9 = smov [#allocation2]   ;;  %s13_s8 = int_to_ptr.hbm [resolvable:$true] %s12_s8 }
   0x2   :  { %s14_s10 = sshll.u32 %s104_s9, 4  ;;  %s105_s11 = smov 128   ;;  %s15_s10 = int_to_ptr.vmem [resolvable:$true] %s14_s10 }
   0x3   :  { %s106_s12 = smov 8  }
   0x4   :  { %20 = dma.hbm_to_vmem [thread:$0]  %s13_s8, 256, %s15_s10, [#allocation3], %s105_s11, %s105_s11, %s106_s12  }
   0x5   :  { %100 = dma.done.wait [#allocation3], 256  }
   0x6   :  { %101 = vsyncadd [#allocation3], 4294967040  ;;  %s107_s13 = smov [#allocation5]   ;;  %s35_s17 = sshll.u32 %s125_s1, 4  ;;  %v25_v0 = vld [vmem:[#allocation2] sm:$0xff]  ;;  %v26_v1 = vld [vmem:[#allocation2 + $0x8] sm:$0xff]  ;;  %s36_s17 = int_to_ptr.hbm [resolvable:$true] %s35_s17 }
   0x7   :  { %s33_s14 = sshll.u32 %s107_s13, 4  ;;  %27 = vst [vmem:[#allocation5] sm:$0xff] %v25_v0  ;;  %s34_s14 = int_to_ptr.vmem [resolvable:$true] %s33_s14 }
   0x8   :  { %28 = vst [vmem:[#allocation5 + $0x8] sm:$0xff] %v26_v1 }
   0x9   :  { %41 = dma.vmem_to_hbm [thread:$0]  %s34_s14, 256, %s36_s17, [#allocation4], %s105_s11, %s105_s11, %s106_s12  }
   0xa   :  { %102 = dma.done.wait [#allocation4], 256  }
   0xb   :  { %103 = vsyncadd [#allocation4], 4294967040 }
   0xc   :  { %46 = vsyncpa [#allocation3], 1 }
   0xd   :  { %47 = vsyncpa [#allocation4], 1 }

</bundles_post_ra>
